<compile_context>
chip_gen: v7x
topology: tpu7x:2x2x1
jax: 0.10.0
libtpu: 0.0.40
codegen_flags: <defaults>
</compile_context>

<pallas_src>
import functools

import jax
import jax.numpy as jnp
from jax.experimental import pallas as pl
from jax.experimental.pallas import tpu as pltpu


# ----------------------------------------------------------------------------
# Pallas kernel: one grid step == `bt` batch elements
# ----------------------------------------------------------------------------
def ggru_kernel(adj_ref,    # (bt, N, N)          bf16
                x_ref,      # (bt*N, Fin)         bf16  (batch-stacked rows)
                w1_ref,     # (Fin, 2*Fp + 5*Fin) bf16  fused x-side weight
                b1_ref,     # (1,   2*Fp + 5*Fin) f32   fused bias (bni, bnh)
                w2_ref,     # (4*Fin, 2*Fp + Fin) bf16  fused agg-side weight
                w3_ref,     # (Fin, Fp)           bf16  w_ni "r*h" half
                bproj_ref,  # (1, Fp)             f32
                out_ref,    # (bt*N, Fp)          f32   (Fp = Fout padded to 128)
                *, bt, n, fin, fout_p):
    f32 = jnp.float32
    bf16 = jnp.bfloat16

    # One fused bf16 MXU matmul covering every x-side linear for all bt batch
    # elements of this grid step (lane width 2*Fp + 5*Fin >= 256).
    xs = jnp.dot(x_ref[...], w1_ref[...], preferred_element_type=f32) + b1_ref[...]

    # Column layout of xs (128-wide chunks first => vreg-aligned slices):
    xa_z_all = xs[:, :fout_p]                               # x part of z pre-act
    xa_n_all = xs[:, fout_p:2 * fout_p]                     # x part of n pre-act (+ bni)
    feat_all = xs[:, 2 * fout_p:2 * fout_p + 4 * fin]       # [h_r | h_z | h_nh+bnh | x]
    xa_r_all = xs[:, 2 * fout_p + 4 * fin:]                 # x part of r pre-act

    w2 = w2_ref[...]
    w3 = w3_ref[...]
    bproj = bproj_ref[...]

    # Static unroll over the (small) batch tile; the adjacency matmuls are
    # inherently per-batch.
    for i in range(bt):
        r0, r1 = i * n, (i + 1) * n
        adj_i = adj_ref[i]                                  # (N, N) bf16

        # torch: adj.sum(dim=1) -> per-batch column sums; single reciprocal,
        # applied once to the fused aggregation result.
        denom = jnp.sum(adj_i.astype(f32), axis=0).reshape(n, 1) + 1.0
        inv_denom = 1.0 / denom

        # One fused aggregation matmul: adj @ [h_r | h_z | h_nh | x].
        agg = jnp.dot(adj_i, feat_all[r0:r1].astype(bf16),
                      preferred_element_type=f32) * inv_denom
        # agg columns: [agg_r | agg_z | h | neigh]

        # Fused agg-side linears (block-structured W2); output [az | pp | ar].
        out2 = jnp.dot(agg.astype(bf16), w2, preferred_element_type=f32)
        az = out2[:, :fout_p]                               # agg_z @ wz_agg
        pp = out2[:, fout_p:2 * fout_p]                     # neigh @ proj_w
        ar = out2[:, 2 * fout_p:]                           # agg_r @ wr_agg

        r = jax.nn.sigmoid(xa_r_all[r0:r1] + ar)            # (N, Fin)
        z = jax.nn.sigmoid(xa_z_all[r0:r1] + az)            # (N, Fp)
        h = agg[:, 2 * fin:3 * fin]                         # (N, Fin)
        p = pp + bproj                                      # proj(neigh)

        nn_ = jnp.tanh(xa_n_all[r0:r1]
                       + jnp.dot((r * h).astype(bf16), w3,
                                 preferred_element_type=f32))

        out_ref[r0:r1, :] = ((1.0 - z) * nn_ + z * p).astype(out_ref.dtype)


# ----------------------------------------------------------------------------
# Wrapper: build fused weights, pick tiles, call pallas_call
# ----------------------------------------------------------------------------
def _build_fused_params(params, fin, fout, fout_p):
    f32 = jnp.float32
    bf16 = jnp.bfloat16

    wr_n = params["wr_neigh_w"].T                    # (Fin, Fin)
    wz_n = params["wz_neigh_w"].T                    # (Fin, Fin)
    wnh = params["w_nh_w"].T                         # (Fin, Fin)
    eye = jnp.eye(fin, dtype=f32)                    # re-emits x for neigh agg
    wr_x = params["wr_lin_w"][:, :fin].T             # (Fin, Fin)
    wr_a = params["wr_lin_w"][:, fin:].T             # (Fin, Fin)
    wz_x = params["wz_lin_w"][:, :fin].T             # (Fin, Fout)
    wz_a = params["wz_lin_w"][:, fin:].T             # (Fin, Fout)
    wni_x = params["w_ni_w"][:, :fin].T              # (Fin, Fout)
    wni_a = params["w_ni_w"][:, fin:].T              # (Fin, Fout)
    wproj = params["proj_w"].T                       # (Fin, Fout)

    padw = lambda w: jnp.pad(w, ((0, 0), (0, fout_p - fout)))
    padb = lambda b: jnp.pad(b, (0, fout_p - fout))

    # W1 columns: [xa_z(Fp) | xa_ni(Fp) | h_r | h_z | h_nh | x | xa_r]
    w1 = jnp.concatenate(
        [padw(wz_x), padw(wni_x), wr_n, wz_n, wnh, eye, wr_x], axis=1)

    # Fused bias row matching W1's column layout (bni on xa_ni, bnh on h_nh).
    b1 = jnp.concatenate([
        jnp.zeros((fout_p,), f32),
        padb(params["w_ni_b"]),
        jnp.zeros((2 * fin,), f32),
        params["w_nh_b"],
        jnp.zeros((2 * fin,), f32),
    ])[None, :]

    # W2: block-structured agg-side weight.
    #   rows (input)  = agg columns [agg_r | agg_z | h | neigh]   (4*Fin)
    #   cols (output) = [az(Fp) | pp(Fp) | ar(Fin)]
    z_ff = jnp.zeros((fin, fout_p), f32)
    z_fi = jnp.zeros((fin, fin), f32)
    w2 = jnp.concatenate([
        jnp.concatenate([z_ff,       z_ff,        wr_a], axis=1),   # agg_r
        jnp.concatenate([padw(wz_a), z_ff,        z_fi], axis=1),   # agg_z
        jnp.concatenate([z_ff,       z_ff,        z_fi], axis=1),   # h (unused here)
        jnp.concatenate([z_ff,       padw(wproj), z_fi], axis=1),   # neigh
    ], axis=0)

    w3 = padw(wni_a)                                  # (Fin, Fp)
    bproj = padb(params["proj_b"])[None, :]           # (1, Fp)

    return w1.astype(bf16), b1, w2.astype(bf16), w3.astype(bf16), bproj


def ggru_forward(x, adj, params, batch_tile=None):
    B, N, Fin = x.shape
    Fout = params["proj_w"].shape[0]
    Fout_p = ((Fout + 127) // 128) * 128              # lane-dense output width

    if batch_tile is None:
        batch_tile = B // 2 if (B >= 2 and B % 2 == 0) else 1
    bt = batch_tile
    assert B % bt == 0, "batch_tile must divide the batch size"
    grid = (B // bt,)                                  # >=2 steps keeps both v7x TCs busy

    w1, b1, w2, w3, bproj = _build_fused_params(params, Fin, Fout, Fout_p)

    adj_bf = adj.astype(jnp.bfloat16)                  # 0/1 adjacency -> exact in bf16
    x_flat = x.reshape(B * N, Fin).astype(jnp.bfloat16)

    kernel = functools.partial(ggru_kernel, bt=bt, n=N, fin=Fin, fout_p=Fout_p)

    const = lambda a: pl.BlockSpec(a.shape, lambda b: (0,) * a.ndim)

    # Explicit VMEM budget (double-buffered blocks + fused weights) w/ headroom.
    blk_bytes = (2 * (bt * N * N * 2)                  # adj (bf16)
                 + 2 * (bt * N * Fin * 2)              # x   (bf16)
                 + 2 * (bt * N * Fout_p * 4)           # out (f32)
                 + 2 * 2 * (w1.size + w2.size + w3.size)
                 + 2 * 4 * (b1.size + bproj.size))
    vmem_limit = int(min(64 * 2**20, max(32 * 2**20, 8 * blk_bytes)))

    out_flat = pl.pallas_call(
        kernel,
        out_shape=jax.ShapeDtypeStruct((B * N, Fout_p), jnp.float32),
        grid_spec=pltpu.PrefetchScalarGridSpec(
            num_scalar_prefetch=0,
            grid=grid,
            in_specs=[
                pl.BlockSpec((bt, N, N), lambda b: (b, 0, 0)),    # adj
                pl.BlockSpec((bt * N, Fin), lambda b: (b, 0)),    # x (stacked rows)
                const(w1), const(b1), const(w2), const(w3), const(bproj),
            ],
            out_specs=pl.BlockSpec((bt * N, Fout_p), lambda b: (b, 0)),
        ),
        compiler_params=pltpu.CompilerParams(
            dimension_semantics=("parallel",),
            vmem_limit_bytes=vmem_limit,
        ),
    )(adj_bf, x_flat, w1, b1, w2, w3, bproj)

    return out_flat.reshape(B, N, Fout_p)[:, :, :Fout]


# ----------------------------------------------------------------------------
# Pure-JAX f32 reference (same bf16 quantization of inputs/weights as kernel)
# ----------------------------------------------------------------------------
def ggru_reference(x, adj, params):
    f32 = jnp.float32
    q = lambda a: a.astype(jnp.bfloat16).astype(f32)   # kernel MXU operands are bf16
    x = q(x)
    adj = q(adj)
    wr_n, wr_l = q(params["wr_neigh_w"]), q(params["wr_lin_w"])
    wz_n, wz_l = q(params["wz_neigh_w"]), q(params["wz_lin_w"])
    wni, wnh, wp = q(params["w_ni_w"]), q(params["w_nh_w"]), q(params["proj_w"])
    bni, bnh, bp = params["w_ni_b"], params["w_nh_b"], params["proj_b"]

    denom = jnp.sum(adj, axis=1)[..., None] + 1.0      # torch adj.sum(dim=1)
    mean_agg = lambda f: jnp.einsum("bij,bjf->bif", adj, f) / denom
    sage = lambda wn, wl: jnp.concatenate([x, mean_agg(x @ wn.T)], -1) @ wl.T

    r = jax.nn.sigmoid(sage(wr_n, wr_l))
    z = jax.nn.sigmoid(sage(wz_n, wz_l))
    h = mean_agg(x @ wnh.T + bnh)
    n = jnp.tanh(jnp.concatenate([x, r * h], -1) @ wni.T + bni)
    neigh = mean_agg(x)
    return (1.0 - z) * n + z * (neigh @ wp.T + bp)


# ----------------------------------------------------------------------------
# Deterministic parameter init (xavier-uniform with relu gain, as in module)
# ----------------------------------------------------------------------------
def xavier_uniform(key, shape, gain=1.0):
    fan_out, fan_in = shape
    limit = gain * jnp.sqrt(6.0 / (fan_in + fan_out))
    return jax.random.uniform(key, shape, jnp.float32, -limit, limit)


def init_params(key, in_features, out_features):
    gain = jnp.sqrt(2.0)  # relu gain
    ks = jax.random.split(key, 10)
    u = lambda k, shp: jax.random.uniform(k, shp, jnp.float32, -0.1, 0.1)
    return {
        "wr_neigh_w": xavier_uniform(ks[0], (in_features, in_features), gain),
        "wr_lin_w":   xavier_uniform(ks[1], (in_features, 2 * in_features), gain),
        "wz_neigh_w": xavier_uniform(ks[2], (in_features, in_features), gain),
        "wz_lin_w":   xavier_uniform(ks[3], (out_features, 2 * in_features), gain),
        "w_ni_w":     xavier_uniform(ks[4], (out_features, 2 * in_features), gain),
        "w_ni_b":     u(ks[5], (out_features,)),
        "w_nh_w":     xavier_uniform(ks[6], (in_features, in_features), gain),
        "w_nh_b":     u(ks[7], (in_features,)),
        "proj_w":     xavier_uniform(ks[8], (out_features, in_features), gain),
        "proj_b":     u(ks[9], (out_features,)),
    }


if __name__ == "__main__":
    B, N, Fin, Fout = 4, 16, 16, 32

    key = jax.random.PRNGKey(0)
    kx, kadj, kp = jax.random.split(key, 3)

    x = jax.random.normal(kx, (B, N, Fin), jnp.float32)
    adj = (jax.random.uniform(kadj, (B, N, N)) < 0.3).astype(jnp.float32)  # dense 0/1
    params = init_params(kp, Fin, Fout)

    out = ggru_forward(x, adj, params)          # batch_tile defaults to 2 -> grid (2,)
    out = jax.block_until_ready(out)

    ref = ggru_reference(x, adj, params)
    assert out.shape == (B, N, Fout)
    max_err = float(jnp.max(jnp.abs(out - ref)))
    # bf16 MXU operands / bf16 intermediate casts vs f32 reference -> loose tol.
    assert jnp.allclose(out, ref, atol=5e-2, rtol=5e-2), \
        f"mismatch vs reference (max abs err {max_err})"

    print("KERNEL_OK")
</pallas_src>

<mosaic_0001>
module attributes {stable_mosaic.version = 11 : i64} {
  func.func @ggru_kernel(%arg0: i32, %arg1: memref<2x16x16xbf16, #tpu.memory_space<vmem>>, %arg2: memref<32x16xbf16, #tpu.memory_space<vmem>>, %arg3: memref<16x336xbf16, #tpu.memory_space<vmem>>, %arg4: memref<1x336xf32, #tpu.memory_space<vmem>>, %arg5: memref<64x272xbf16, #tpu.memory_space<vmem>>, %arg6: memref<16x128xbf16, #tpu.memory_space<vmem>>, %arg7: memref<1x128xf32, #tpu.memory_space<vmem>>, %arg8: memref<32x128xf32, #tpu.memory_space<vmem>>) attributes {dimension_semantics = [#tpu.dimension_semantics<parallel>], iteration_bounds = array<i64: 2>, scalar_prefetch = 0 : i64, scratch_operands = 0 : i64, tpu.core_type = #tpu.core_type<tc>, window_params = [{transform_indices = @transform_0, window_bounds = array<i64: 2, 16, 16>}, {transform_indices = @transform_1, window_bounds = array<i64: 32, 16>}, {pipeline_mode = #tpu.pipeline_mode<synchronous>, transform_indices = @transform_2, window_bounds = array<i64: 16, 336>}, {pipeline_mode = #tpu.pipeline_mode<synchronous>, transform_indices = @transform_3, window_bounds = array<i64: 1, 336>}, {pipeline_mode = #tpu.pipeline_mode<synchronous>, transform_indices = @transform_4, window_bounds = array<i64: 64, 272>}, {pipeline_mode = #tpu.pipeline_mode<synchronous>, transform_indices = @transform_5, window_bounds = array<i64: 16, 128>}, {pipeline_mode = #tpu.pipeline_mode<synchronous>, transform_indices = @transform_6, window_bounds = array<i64: 1, 128>}, {transform_indices = @transform_7, window_bounds = array<i64: 32, 128>}]} {
    %c0 = arith.constant 0 : index
    %c0_0 = arith.constant 0 : index
    %0 = vector.load %arg2[%c0, %c0_0] : memref<32x16xbf16, #tpu.memory_space<vmem>>, vector<32x16xbf16>
    %c0_1 = arith.constant 0 : index
    %c0_2 = arith.constant 0 : index
    %1 = vector.load %arg3[%c0_1, %c0_2] : memref<16x336xbf16, #tpu.memory_space<vmem>>, vector<16x336xbf16>
    %cst = arith.constant dense<0.000000e+00> : vector<32x336xf32>
    %2 = tpu.matmul %0, %1, %cst {dimension_numbers = #tpu.dot_dimension_numbers<[1], [0], [0], [1], [0, 0, 1, 1], [], []>} : vector<32x16xbf16>, vector<16x336xbf16>, vector<32x336xf32> -> vector<32x336xf32>
    %c0_3 = arith.constant 0 : index
    %c0_4 = arith.constant 0 : index
    %3 = vector.load %arg4[%c0_3, %c0_4] : memref<1x336xf32, #tpu.memory_space<vmem>>, vector<1x336xf32>
    %4 = vector.broadcast %3 : vector<1x336xf32> to vector<32x336xf32>
    %5 = arith.addf %2, %4 : vector<32x336xf32>
    %6 = vector.extract_strided_slice %5 {offsets = [0, 0], sizes = [32, 128], strides = [1, 1]} : vector<32x336xf32> to vector<32x128xf32>
    %7 = vector.extract_strided_slice %5 {offsets = [0, 128], sizes = [32, 128], strides = [1, 1]} : vector<32x336xf32> to vector<32x128xf32>
    %8 = vector.extract_strided_slice %5 {offsets = [0, 256], sizes = [32, 64], strides = [1, 1]} : vector<32x336xf32> to vector<32x64xf32>
    %9 = vector.extract_strided_slice %5 {offsets = [0, 320], sizes = [32, 16], strides = [1, 1]} : vector<32x336xf32> to vector<32x16xf32>
    %c0_5 = arith.constant 0 : index
    %c0_6 = arith.constant 0 : index
    %10 = vector.load %arg5[%c0_5, %c0_6] : memref<64x272xbf16, #tpu.memory_space<vmem>>, vector<64x272xbf16>
    %c0_7 = arith.constant 0 : index
    %c0_8 = arith.constant 0 : index
    %11 = vector.load %arg6[%c0_7, %c0_8] : memref<16x128xbf16, #tpu.memory_space<vmem>>, vector<16x128xbf16>
    %c0_9 = arith.constant 0 : index
    %c0_10 = arith.constant 0 : index
    %12 = vector.load %arg7[%c0_9, %c0_10] : memref<1x128xf32, #tpu.memory_space<vmem>>, vector<1x128xf32>
    %c0_11 = arith.constant 0 : index
    %c0_12 = arith.constant 0 : index
    %c0_13 = arith.constant 0 : index
    %13 = vector.load %arg1[%c0_11, %c0_12, %c0_13] : memref<2x16x16xbf16, #tpu.memory_space<vmem>>, vector<1x16x16xbf16>
    %14 = vector.shape_cast %13 : vector<1x16x16xbf16> to vector<16x16xbf16>
    %15 = arith.extf %14 : vector<16x16xbf16> to vector<16x16xf32>
    %cst_14 = arith.constant dense<0.000000e+00> : vector<16xf32>
    %16 = vector.multi_reduction <add>, %15, %cst_14 [0] : vector<16x16xf32> to vector<16xf32>
    %17 = vector.shape_cast %16 : vector<16xf32> to vector<16x1xf32>
    %cst_15 = arith.constant 1.000000e+00 : f32
    %18 = vector.broadcast %cst_15 : f32 to vector<16x1xf32>
    %19 = arith.addf %17, %18 : vector<16x1xf32>
    %cst_16 = arith.constant 1.000000e+00 : f32
    %20 = vector.broadcast %cst_16 : f32 to vector<16x1xf32>
    %21 = arith.divf %20, %19 : vector<16x1xf32>
    %22 = vector.extract_strided_slice %8 {offsets = [0, 0], sizes = [16, 64], strides = [1, 1]} : vector<32x64xf32> to vector<16x64xf32>
    %23 = arith.truncf %22 : vector<16x64xf32> to vector<16x64xbf16>
    %cst_17 = arith.constant dense<0.000000e+00> : vector<16x64xf32>
    %24 = tpu.matmul %14, %23, %cst_17 {dimension_numbers = #tpu.dot_dimension_numbers<[1], [0], [0], [1], [0, 0, 1, 1], [], []>} : vector<16x16xbf16>, vector<16x64xbf16>, vector<16x64xf32> -> vector<16x64xf32>
    %25 = vector.broadcast %21 : vector<16x1xf32> to vector<16x64xf32>
    %26 = arith.mulf %24, %25 : vector<16x64xf32>
    %27 = arith.truncf %26 : vector<16x64xf32> to vector<16x64xbf16>
    %cst_18 = arith.constant dense<0.000000e+00> : vector<16x272xf32>
    %28 = tpu.matmul %27, %10, %cst_18 {dimension_numbers = #tpu.dot_dimension_numbers<[1], [0], [0], [1], [0, 0, 1, 1], [], []>} : vector<16x64xbf16>, vector<64x272xbf16>, vector<16x272xf32> -> vector<16x272xf32>
    %29 = vector.extract_strided_slice %28 {offsets = [0, 0], sizes = [16, 128], strides = [1, 1]} : vector<16x272xf32> to vector<16x128xf32>
    %30 = vector.extract_strided_slice %28 {offsets = [0, 128], sizes = [16, 128], strides = [1, 1]} : vector<16x272xf32> to vector<16x128xf32>
    %31 = vector.extract_strided_slice %28 {offsets = [0, 256], sizes = [16, 16], strides = [1, 1]} : vector<16x272xf32> to vector<16x16xf32>
    %32 = vector.extract_strided_slice %9 {offsets = [0, 0], sizes = [16, 16], strides = [1, 1]} : vector<32x16xf32> to vector<16x16xf32>
    %33 = arith.addf %32, %31 : vector<16x16xf32>
    %34 = arith.negf %33 : vector<16x16xf32>
    %35 = math.exp %34 : vector<16x16xf32>
    %cst_19 = arith.constant 1.000000e+00 : f32
    %36 = vector.broadcast %cst_19 : f32 to vector<16x16xf32>
    %37 = arith.addf %36, %35 : vector<16x16xf32>
    %38 = arith.divf %36, %37 : vector<16x16xf32>
    %39 = vector.extract_strided_slice %6 {offsets = [0, 0], sizes = [16, 128], strides = [1, 1]} : vector<32x128xf32> to vector<16x128xf32>
    %40 = arith.addf %39, %29 : vector<16x128xf32>
    %41 = arith.negf %40 : vector<16x128xf32>
    %42 = math.exp %41 : vector<16x128xf32>
    %cst_20 = arith.constant 1.000000e+00 : f32
    %43 = vector.broadcast %cst_20 : f32 to vector<16x128xf32>
    %44 = arith.addf %43, %42 : vector<16x128xf32>
    %45 = arith.divf %43, %44 : vector<16x128xf32>
    %46 = vector.extract_strided_slice %26 {offsets = [0, 32], sizes = [16, 16], strides = [1, 1]} : vector<16x64xf32> to vector<16x16xf32>
    %47 = vector.broadcast %12 : vector<1x128xf32> to vector<16x128xf32>
    %48 = arith.addf %30, %47 : vector<16x128xf32>
    %49 = vector.extract_strided_slice %7 {offsets = [0, 0], sizes = [16, 128], strides = [1, 1]} : vector<32x128xf32> to vector<16x128xf32>
    %50 = arith.mulf %38, %46 : vector<16x16xf32>
    %51 = arith.truncf %50 : vector<16x16xf32> to vector<16x16xbf16>
    %cst_21 = arith.constant dense<0.000000e+00> : vector<16x128xf32>
    %52 = tpu.matmul %51, %11, %cst_21 {dimension_numbers = #tpu.dot_dimension_numbers<[1], [0], [0], [1], [0, 0, 1, 1], [], []>} : vector<16x16xbf16>, vector<16x128xbf16>, vector<16x128xf32> -> vector<16x128xf32>
    %53 = arith.addf %49, %52 : vector<16x128xf32>
    %54 = math.tanh %53 : vector<16x128xf32>
    %cst_22 = arith.constant 1.000000e+00 : f32
    %55 = vector.broadcast %cst_22 : f32 to vector<16x128xf32>
    %56 = arith.subf %55, %45 : vector<16x128xf32>
    %57 = arith.mulf %56, %54 : vector<16x128xf32>
    %58 = arith.mulf %45, %48 : vector<16x128xf32>
    %59 = arith.addf %57, %58 : vector<16x128xf32>
    %c0_23 = arith.constant 0 : index
    %c0_24 = arith.constant 0 : index
    %60 = vector.load %arg8[%c0_23, %c0_24] : memref<32x128xf32, #tpu.memory_space<vmem>>, vector<16x128xf32>
    tpu.vector_store %arg8[%c0_23, %c0_24], %59 {strides = array<i32>} : memref<32x128xf32, #tpu.memory_space<vmem>>, vector<16x128xf32>,
    %c1 = arith.constant 1 : index
    %c0_25 = arith.constant 0 : index
    %c0_26 = arith.constant 0 : index
    %61 = vector.load %arg1[%c1, %c0_25, %c0_26] : memref<2x16x16xbf16, #tpu.memory_space<vmem>>, vector<1x16x16xbf16>
    %62 = vector.shape_cast %61 : vector<1x16x16xbf16> to vector<16x16xbf16>
    %63 = arith.extf %62 : vector<16x16xbf16> to vector<16x16xf32>
    %cst_27 = arith.constant dense<0.000000e+00> : vector<16xf32>
    %64 = vector.multi_reduction <add>, %63, %cst_27 [0] : vector<16x16xf32> to vector<16xf32>
    %65 = vector.shape_cast %64 : vector<16xf32> to vector<16x1xf32>
    %cst_28 = arith.constant 1.000000e+00 : f32
    %66 = vector.broadcast %cst_28 : f32 to vector<16x1xf32>
    %67 = arith.addf %65, %66 : vector<16x1xf32>
    %cst_29 = arith.constant 1.000000e+00 : f32
    %68 = vector.broadcast %cst_29 : f32 to vector<16x1xf32>
    %69 = arith.divf %68, %67 : vector<16x1xf32>
    %70 = vector.extract_strided_slice %8 {offsets = [16, 0], sizes = [16, 64], strides = [1, 1]} : vector<32x64xf32> to vector<16x64xf32>
    %71 = arith.truncf %70 : vector<16x64xf32> to vector<16x64xbf16>
    %cst_30 = arith.constant dense<0.000000e+00> : vector<16x64xf32>
    %72 = tpu.matmul %62, %71, %cst_30 {dimension_numbers = #tpu.dot_dimension_numbers<[1], [0], [0], [1], [0, 0, 1, 1], [], []>} : vector<16x16xbf16>, vector<16x64xbf16>, vector<16x64xf32> -> vector<16x64xf32>
    %73 = vector.broadcast %69 : vector<16x1xf32> to vector<16x64xf32>
    %74 = arith.mulf %72, %73 : vector<16x64xf32>
    %75 = arith.truncf %74 : vector<16x64xf32> to vector<16x64xbf16>
    %cst_31 = arith.constant dense<0.000000e+00> : vector<16x272xf32>
    %76 = tpu.matmul %75, %10, %cst_31 {dimension_numbers = #tpu.dot_dimension_numbers<[1], [0], [0], [1], [0, 0, 1, 1], [], []>} : vector<16x64xbf16>, vector<64x272xbf16>, vector<16x272xf32> -> vector<16x272xf32>
    %77 = vector.extract_strided_slice %76 {offsets = [0, 0], sizes = [16, 128], strides = [1, 1]} : vector<16x272xf32> to vector<16x128xf32>
    %78 = vector.extract_strided_slice %76 {offsets = [0, 128], sizes = [16, 128], strides = [1, 1]} : vector<16x272xf32> to vector<16x128xf32>
    %79 = vector.extract_strided_slice %76 {offsets = [0, 256], sizes = [16, 16], strides = [1, 1]} : vector<16x272xf32> to vector<16x16xf32>
    %80 = vector.extract_strided_slice %9 {offsets = [16, 0], sizes = [16, 16], strides = [1, 1]} : vector<32x16xf32> to vector<16x16xf32>
    %81 = arith.addf %80, %79 : vector<16x16xf32>
    %82 = arith.negf %81 : vector<16x16xf32>
    %83 = math.exp %82 : vector<16x16xf32>
    %cst_32 = arith.constant 1.000000e+00 : f32
    %84 = vector.broadcast %cst_32 : f32 to vector<16x16xf32>
    %85 = arith.addf %84, %83 : vector<16x16xf32>
    %86 = arith.divf %84, %85 : vector<16x16xf32>
    %87 = vector.extract_strided_slice %6 {offsets = [16, 0], sizes = [16, 128], strides = [1, 1]} : vector<32x128xf32> to vector<16x128xf32>
    %88 = arith.addf %87, %77 : vector<16x128xf32>
    %89 = arith.negf %88 : vector<16x128xf32>
    %90 = math.exp %89 : vector<16x128xf32>
    %cst_33 = arith.constant 1.000000e+00 : f32
    %91 = vector.broadcast %cst_33 : f32 to vector<16x128xf32>
    %92 = arith.addf %91, %90 : vector<16x128xf32>
    %93 = arith.divf %91, %92 : vector<16x128xf32>
    %94 = vector.extract_strided_slice %74 {offsets = [0, 32], sizes = [16, 16], strides = [1, 1]} : vector<16x64xf32> to vector<16x16xf32>
    %95 = vector.broadcast %12 : vector<1x128xf32> to vector<16x128xf32>
    %96 = arith.addf %78, %95 : vector<16x128xf32>
    %97 = vector.extract_strided_slice %7 {offsets = [16, 0], sizes = [16, 128], strides = [1, 1]} : vector<32x128xf32> to vector<16x128xf32>
    %98 = arith.mulf %86, %94 : vector<16x16xf32>
    %99 = arith.truncf %98 : vector<16x16xf32> to vector<16x16xbf16>
    %cst_34 = arith.constant dense<0.000000e+00> : vector<16x128xf32>
    %100 = tpu.matmul %99, %11, %cst_34 {dimension_numbers = #tpu.dot_dimension_numbers<[1], [0], [0], [1], [0, 0, 1, 1], [], []>} : vector<16x16xbf16>, vector<16x128xbf16>, vector<16x128xf32> -> vector<16x128xf32>
    %101 = arith.addf %97, %100 : vector<16x128xf32>
    %102 = math.tanh %101 : vector<16x128xf32>
    %cst_35 = arith.constant 1.000000e+00 : f32
    %103 = vector.broadcast %cst_35 : f32 to vector<16x128xf32>
    %104 = arith.subf %103, %93 : vector<16x128xf32>
    %105 = arith.mulf %104, %102 : vector<16x128xf32>
    %106 = arith.mulf %93, %96 : vector<16x128xf32>
    %107 = arith.addf %105, %106 : vector<16x128xf32>
    %c16 = arith.constant 16 : index
    %c0_36 = arith.constant 0 : index
    %108 = vector.load %arg8[%c16, %c0_36] : memref<32x128xf32, #tpu.memory_space<vmem>>, vector<16x128xf32>
    tpu.vector_store %arg8[%c16, %c0_36], %107 {strides = array<i32>} : memref<32x128xf32, #tpu.memory_space<vmem>>, vector<16x128xf32>,
    return
  }
  func.func @transform_0(%arg0: i32) -> (i32, i32, i32) {
    %c0_i32 = arith.constant 0 : i32
    %c0_i32_0 = arith.constant 0 : i32
    %c0_i32_1 = arith.constant 0 : i32
    return %arg0, %c0_i32, %c0_i32_0 : i32, i32, i32
  }
  func.func @transform_1(%arg0: i32) -> (i32, i32) {
    %c0_i32 = arith.constant 0 : i32
    %c0_i32_0 = arith.constant 0 : i32
    return %arg0, %c0_i32 : i32, i32
  }
  func.func @transform_2(%arg0: i32) -> (i32, i32) {
    %c0_i32 = arith.constant 0 : i32
    %c0_i32_0 = arith.constant 0 : i32
    %c0_i32_1 = arith.constant 0 : i32
    return %c0_i32, %c0_i32_0 : i32, i32
  }
  func.func @transform_3(%arg0: i32) -> (i32, i32) {
    %c0_i32 = arith.constant 0 : i32
    %c0_i32_0 = arith.constant 0 : i32
    %c0_i32_1 = arith.constant 0 : i32
    return %c0_i32, %c0_i32_0 : i32, i32
  }
  func.func @transform_4(%arg0: i32) -> (i32, i32) {
    %c0_i32 = arith.constant 0 : i32
    %c0_i32_0 = arith.constant 0 : i32
    %c0_i32_1 = arith.constant 0 : i32
    return %c0_i32, %c0_i32_0 : i32, i32
  }
  func.func @transform_5(%arg0: i32) -> (i32, i32) {
    %c0_i32 = arith.constant 0 : i32
    %c0_i32_0 = arith.constant 0 : i32
    %c0_i32_1 = arith.constant 0 : i32
    return %c0_i32, %c0_i32_0 : i32, i32
  }
  func.func @transform_6(%arg0: i32) -> (i32, i32) {
    %c0_i32 = arith.constant 0 : i32
    %c0_i32_0 = arith.constant 0 : i32
    %c0_i32_1 = arith.constant 0 : i32
    return %c0_i32, %c0_i32_0 : i32, i32
  }
  func.func @transform_7(%arg0: i32) -> (i32, i32) {
    %c0_i32 = arith.constant 0 : i32
    %c0_i32_0 = arith.constant 0 : i32
    return %arg0, %c0_i32 : i32, i32
  }
}

</mosaic_0001>

<bundles_post_ra>
// kernel: tpu_custom_call.1
= control target key start
LH: loop header
LB: loop body
LE: loop exit
PB: predicated region body
PF: predicated region fallthrough
CT: control target
= control target key end

     0   :  { %12 = vsyncpa [#allocation3], 0  ;;  %s2074_s0 = inlined_call_operand.vmem [shape: bf16[4,16,16], index: 0, kind: input, shape index: {}]   ;;  %s2075_s1 = inlined_call_operand.vmem [shape: bf16[64,16], index: 1, kind: input, shape index: {}]   ;;  %s2076_s2 = inlined_call_operand.hbm [shape: bf16[16,336], index: 2, kind: input, shape index: {}]   ;;  %s2077_s3 = inlined_call_operand.vmem [shape: f32[1,336], index: 3, kind: input, shape index: {}]   ;;  %s2078_s4 = inlined_call_operand.hbm [shape: bf16[64,272], index: 4, kind: input, shape index: {}]   ;;  %s2079_s5 = inlined_call_operand.vmem [shape: bf16[16,128], index: 5, kind: input, shape index: {}]   ;;  %s2080_s6 = inlined_call_operand.vmem [shape: f32[1,128], index: 6, kind: input, shape index: {}]   ;;  %s2081_s7 = inlined_call_operand.hbm [shape: f32[64,128], index: 7, kind: output, shape index: {}]  }
   0x1   :  { %13 = vsyncpa [#allocation6], 0 }
   0x2   :  { %14 = vsyncpa [#allocation4], 0 }
   0x3   :  { %16 = vsyncpa [#allocation4 + $0x1], 0  ;;  %s1718_s24 = smov 0   ;;  %s1720_s25 = smov 0  }
   0x4   :  { %s1722_s26 = smov 0   ;;  %s1724_s27 = smov 0  }
   0x5 LB: > { %s1739_s28 = sadd.s32 4294967295, %s1664_s27   ;;  %s1255_s29 = sadd.s32 4294967294, %s1664_s27   ;;  %s1664_s27 = sphi %s1724_s27, %s2101_s27   ;;  %s1660_s26 = sphi %s1722_s26, %s2100_s26   ;;  %s1656_s25 = sphi %s1720_s25, %s2099_s25   ;;  %s1652_s24 = sphi %s1718_s24, %s2098_s24  }
   0x6   : > { %s1743_s30 = sadd.s32 1, %s1664_s27   ;;  %s186_s8 = sadd.s32 1, %s1660_s26 }
   0x7   : > { %s183_s9 = ssub.s32 %s1664_s27, %s1743_s30  ;;  %p196_p0 = scmp.ne.s32.totalorder %s1660_s26, %s1656_s25 }
   0x8   : > { %p184_p1 = scmp.eq.s32.totalorder %s183_s9, 0  ;;  %p197_p2 = scmp.eq.s32.totalorder %s1739_s28, 1 }
   0x9   : > { %p202_p3 = scmp.ne.s32.totalorder %s1656_s25, %s1652_s24  ;;  %p203_p4 = scmp.eq.s32.totalorder %s1255_s29, 1 }
   0xa   : > { %s1754_s10 = scalar_select %p184_p1, %s1660_s26, %s186_s8  }
   0xb   : > { %p1756_p5 = por %p197_p2, %p196_p0  ;;  %p1760_p6 = por %p203_p4, %p202_p3 }
   0xc   : > { %2085 = sst [smem:[#allocation11_spill]] %s1754_s10  ;;  %p1256_p7 = scmp.ge.s32.totalorder %s1664_s27, 1 }
   0xd   : > { %s2086_s11 = scalar_select %p1756_p5, 1, 0 }
   0xe   : > { %s2087_s12 = scalar_select %p1760_p6, 1, 0 }
   0xf   : > { %p210_p8 = scmp.lt.s32.totalorder %s1664_s27, 3  ;;  %p2082_p9 = scmp.eq.s32.totalorder %s1739_s28, 0 }
  0x10   : > { %s1666_s14 = smov [#allocation2]   ;;  %s1667_s17 = smov [#allocation5]  }
  0x11   : > { %p1767_p10 = pnand %p1256_p7, %p210_p8  ;;  %s222_s15 = sshll.u32 %s1666_s14, 4  ;;  %s223_s15 = int_to_ptr.vmem [resolvable:$true] %s222_s15 }
  0x12   : > { %s238_s18 = sshll.u32 %s1667_s17, 4  ;;  %s1538_s21 = scalar_lea.hbm %s2076_s2, 384  ;;  %s1779_s18 = int_to_ptr.vmem [resolvable:$true] %s238_s18 }
  0x13   : > { %s2088_s13 = scalar_select %p1767_p10, 1, 0 }
  0x14   : > { %p1404_p11 = pneg %p1767_p10  ;;  %p1539_p13 = scmp.ne.s32.totalorder %s2076_s2, %s1538_s21 }
  0x15   : > { %p1545_p3 = scmp.lt.u32.totalorder %s1538_s21, %s2076_s2 }
  0x16   : > { %p1775_p12 = pnand %p2082_p9, %p1404_p11 }
  0x18   : > { %p1540_p0 = pneg %p1775_p12 }
  0x1a   : > { %p1541_p1 = pnand %p1540_p0, %p1539_p13 }
  0x1c   : > { %p1542_p2 = pneg %p1541_p1 }
  0x1e   : > { %p1547_p4 = pnand %p1545_p3, %p1542_p2 }
  0x20   : > { %1550 = shalt.err (!%p1547_p4)
}
  0x21   : > { %s1551_s9 = scalar_lea.vmem %s223_s15, 384  ;;  %p1559_p9 = scmp.lt.s32.totalorder %s223_s15, %s223_s15 }
  0x22   : > { %p1552_p7 = scmp.ne.s32.totalorder %s223_s15, %s1551_s9  ;;  %p1560_p6 = scmp.lt.s32.totalorder %s1551_s9, %s1551_s9 }
  0x24   : > { %p1554_p8 = pnand %p1552_p7, %p1540_p0  ;;  %p1561_p5 = por %p1560_p6, %p1559_p9 }
  0x26   : > { %p1555_p11 = pneg %p1554_p8 }
  0x28   : > { %p1562_p10 = pnand %p1561_p5, %p1555_p11 }
  0x2a   : > { %1565 = shalt.err (!%p1562_p10)
}
  0x2b   : > { %s1668_s14 = smov 192   ;;  %s1669_s17 = smov 12  }
  0x2c   : > { %1407 = dma.hbm_to_vmem [thread:$0]  (!%p1775_p12), %s2076_s2, 384, %s223_s15, [#allocation3], %s1668_s14, %s1668_s14, %s1669_s17  }
  0x2d   : > { %s1566_s23 = scalar_lea.hbm %s2078_s4, 1536 }
  0x2e   : > { %p1567_p13 = scmp.ne.s32.totalorder %s2078_s4, %s1566_s23  ;;  %p1573_p9 = scmp.lt.u32.totalorder %s1566_s23, %s2078_s4 }
  0x30   : > { %p1569_p5 = pnand %p1567_p13, %p1540_p0 }
  0x32   : > { %p1570_p6 = pneg %p1569_p5 }
  0x34   : > { %p1575_p10 = pnand %p1573_p9, %p1570_p6 }
  0x36   : > { %1578 = shalt.err (!%p1575_p10)
}
  0x37   : > { %s1579_s15 = scalar_lea.vmem %s1779_s18, 1536  ;;  %p1587_p4 = scmp.lt.s32.totalorder %s1779_s18, %s1779_s18 }
  0x38   : > { %p1580_p1 = scmp.ne.s32.totalorder %s1779_s18, %s1579_s15  ;;  %p1588_p7 = scmp.lt.s32.totalorder %s1579_s15, %s1579_s15 }
  0x3a   : > { %p1582_p2 = pnand %p1580_p1, %p1540_p0  ;;  %p1589_p8 = por %p1588_p7, %p1587_p4 }
  0x3c   : > { %p1583_p3 = pneg %p1582_p2 }
  0x3e   : > { %p1590_p11 = pnand %p1589_p8, %p1583_p3 }
  0x40   : > { %1593 = shalt.err (!%p1590_p11)
}
  0x41   : > { %1410 = dma.hbm_to_vmem [thread:$0]  (!%p1775_p12), %s2078_s4, 1536, %s1779_s18, [#allocation6], %s1668_s14, %s1668_s14, %s1669_s17  }
  0x42   : > { %p2090_p13 = scmp.ne.s32.totalorder %s2088_s13, 0 }
  0x43   : > { %p2091_p5 = scmp.eq.s32.totalorder (!%p2090_p13), %s1739_s28, 0 }
  0x44   : > { %279 = sbr.rel (%p2090_p13) target bundleno = 1954 (0x7a2), region = 48 }
  0x4b   : > { %1639 = dma.done.wait (%p2091_p5), [#allocation3], 384   ;;  %p2092_p0 = pmov %p2091_p5 }
  0x4d   : > { %1641 = vsyncadd (%p2092_p0), [#allocation3], 4294966912  ;;  %p2093_p6 = pmov %p2092_p0 }
  0x4e   : > { %p2094_p9 = pmov %p2092_p0 }
  0x4f   : > { %1643 = dma.done.wait (%p2093_p6), [#allocation6], 1536  }
  0x50   : > { %1645 = vsyncadd (%p2094_p9), [#allocation6], 4294965760  ;;  %s1267_s16 = sshll.u32 %s1739_s28, 2  ;;  %vm387_vm0 = vcmask 130048   ;;  %v1463_v0 = vld [vmem:[#allocation2 + $0x8] ss:$12 sps:$4 sm:$0xff]   ;;  %v346_v25 = vlaneseq }
  0x51   : > { %p329_p10 = scmp.lt.s32.totalorder %s1267_s16, 7  ;;  %1340 = vmatprep.subr.bf16.mxu1 %v1463_v0  ;;  %s1264_s20 = sshll.u32 %s1739_s28, 1  ;;  %v1670_v3 = vmov 0.0   ;;  %vm1671_vm1 = vmmov 0   ;;  %v1467_v11 = vld [vmem:[#allocation2 + $0x4] ss:$12 sps:$4 sm:$0xff]  }
  0x52   : > { %1341 = vmatpush3.bf16.msra.mxu1 %v1463_v0  ;;  %p322_p12 = scmp.lt.s32.totalorder %s1264_s20, 3  ;;  %v1469_v12 = vld [vmem:[#allocation2] ss:$12 sps:$4 sm:$0xff]   ;;  %394 = vmatprep.subr.bf16.mxu0 %v1467_v11  ;;  %v1856_v15 = vld [vmem:[#allocation5] ss:$12 sps:$4 sm:$0xff]   ;;  %v1672_v18 = vmov 0  }
  0x53   : > { %s2103_s16 = smov (!%p329_p10, %s1267_s16), 7  ;;  %1346 = vmatprep.subr.bf16.mxu1 %v1670_v3  ;;  %395 = vmatpush1.bf16.msra.mxu0 %v1469_v12  ;;  %v1472_v16 = vld [vmem:[#allocation5 + $0x4] ss:$12 sps:$4 sm:$0xff]   ;;  %v1859_v19 = vld [vmem:[#allocation5 + $0x1c] ss:$12 sps:$4 sm:$0xff]   ;;  %v347_v26 = vshrl.u32 %v346_v25, 7 }
  0x54   : > { %s1268_s18 = sshll.u32 %s2103_s16, 2  ;;  %s2105_s20 = smov (!%p322_p12, %s1264_s20), 3  ;;  %426 = vmatprep.mubr.bf16.mxu0 %v1672_v18  ;;  %662 = vmatprep.subr.bf16.mxu0 %v1472_v16  ;;  %v1863_v21 = vld [vmem:[#allocation5 + $0x18] ss:$12 sps:$4 sm:$0xff]   ;;  %v1867_v22 = vld [vmem:[#allocation5 + $0x34] ss:$12 sps:$4 sm:$0xff]  }
  0x55   : > { %s332_s17 = scalar_lea.vmem %s2075_s1, %s1268_s18  ;;  %s1317_s21 = sshll.u32 %s2105_s20, 3  ;;  %v1870_v24 = vld [vmem:[#allocation5 + $0x30] ss:$12 sps:$4 sm:$0xff]   ;;  %v356_v27 = vsub.s32 2, %v347_v26  ;;  %v344_v28 = vld [vmem:[%s2077_s3] sm:$0x7] }
  0x56   : > { %v1464_v1 = vld [vmem:[%s332_s17] sm:$0xff]   ;;  %v1465_v2 = vld [vmem:[%s332_s17 + $0x8] sm:$0xff]   ;;  %s1849_s29 = scalar_lea.vmem %s2074_s0, %s1317_s21  ;;  %v1901_v41 = vld [vmem:[#allocation5 + $0x38] ss:$12 sps:$4 sm:$0xff]   ;;  %v348_v49 = vsub.s32 0, %v347_v26  ;;  %v352_v51 = vsub.s32 1, %v347_v26 }
  0x57   : > { %1342 = vmatprep.mubr.msk.bf16.mxu1 %vm387_vm0, %v1464_v1  ;;  %v515_v4 = vld [vmem:[%s1849_s29] sm:$0xff]   ;;  %1274 = vmatmul.mubr.msk.bf16.vlgmr.msra.gmra.mrb[0].mxu0 %vm387_vm0, %v1464_v1  ;;  %v357_v29 = vrot.slane %v344_v28, %v356_v27  ;;  %v1905_v44 = vld [vmem:[#allocation5 + $0x50] ss:$12 sps:$4 sm:$0xff]   ;;  %s1673_s15 = smov 32   ;;  %vm658_vm2 = vcmask 523264   ;;  %s1674_s10 = smov 64  }
  0x58   : > { %1343 = vmatmul.mubr.msk.bf16.vlgmr.msra.gmra.mrb[0].mxu1 %vm387_vm0, %v1465_v2  ;;  %v517_v5 = vunpack.c.l.bf16 %v515_v4  ;;  %v518_v6 = vunpack.c.h.bf16 %v515_v4  ;;  %663 = vmatpush1.bf16.msra.mxu0 %v1856_v15  ;;  %v1889_v39 = vld [vmem:[#allocation5 + $0x8] ss:$12 sps:$4 sm:$0xff]   ;;  %v1894_v40 = vld [vmem:[#allocation5 + $0x20] ss:$12 sps:$4 sm:$0xff]   ;;  %v349_v54 = vrot.slane %v344_v28, %v348_v49  ;;  %v1913_v56 = vrot.slane %v344_v28, %v352_v51  ;;  %s318_s14 = sand.u32 1, %s1656_s25   ;;  %s1318_s21 = sshll.u32 %s1739_s28, 9 }
  0x59   : > { %1348 = vmatprep.mubr.msk.bf16.mxu1 %vm1671_vm1, %v1670_v3  ;;  %436 = vmatprep.mubr.bf16.mxu0 %v1672_v18  ;;  %v1484_v42 = vld [vmem:[#allocation5 + $0x4c] ss:$12 sps:$4 sm:$0xff]   ;;  %v1482_v43 = vld [vmem:[#allocation5 + $0x48] ss:$12 sps:$4 sm:$0xff]   ;;  %s1263_s17 = sshll.u32 %s318_s14, 5  ;;  %s2025_s8 = scalar_lea.hbm %s2081_s7, %s1318_s21 }
  0x5a   : > { %v519_v7 = vsel %vm387_vm0, %v517_v5, 0.0  ;;  %v520_v8 = vsel %vm387_vm0, %v518_v6, 0.0  ;;  %664 = vmatprep.subr.bf16.mxu0 %v1859_v19  ;;  %s2001_s20 = scalar_lea.vmem [#allocation7], %s1263_s17  ;;  %s2033_s9 = scalar_lea.sflag [#allocation4], %s318_s14 }
  0x5b   : > { %v521_v9 = vadd.f32 %v520_v8, %v519_v7  ;;  %s1159_s22 = sshll.u32 %s2001_s20, 4  ;;  %p2095_p2 = scmp.ne.s32.totalorder %s2086_s11, 0  ;;  %s2027_s22 = int_to_ptr.vmem [resolvable:$true] %s1159_s22 }
  0x5c   : > { %665 = vmatpush1.bf16.msra.mxu0 %v1863_v21  ;;  %s1594_s28 = scalar_lea.vmem %s2027_s22, 512 }
  0x5d   : > { %v522_v10 = vrot.slane %v521_v9, 4  ;;  %666 = vmatprep.subr.bf16.mxu0 %v1867_v22  ;;  %p1595_p1 = scmp.ne.s32.totalorder %s2027_s22, %s1594_s28 }
  0x5f   : > { %v523_v13 = vadd.f32 %v522_v10, %v521_v9  ;;  %1275 = vmatmul.mubr.msk.bf16.gmra.mrb[4].mxu0 %vm387_vm0, %v1465_v2  ;;  %p1596_p3 = pnand %p1595_p1, %p2095_p2 }
  0x60   : > { %667 = vmatpush1.bf16.msra.mxu0 %v1870_v24  ;;  %694 = vmatprep.mubr.bf16.mxu0 %v1672_v18 }
  0x61   : > { %v524_v14 = vrot.slane %v523_v13, 2  ;;  %668 = vmatprep.subr.bf16.mxu0 %v1484_v42  ;;  %p1597_p4 = pneg %p1596_p3 }
  0x63   : > { %v525_v17 = vadd.f32 %v524_v14, %v523_v13 }
  0x64   : > { %669 = vmatpush1.bf16.msra.mxu0 %v1482_v43 }
  0x65   : > { %v526_v20 = vrot.slane %v525_v17, 1  ;;  %1364 = vmatprep.subr.bf16.mxu0 %v1670_v3 }
  0x67   : > { %v527_v23 = vadd.f32 %v526_v20, %v525_v17 }
  0x69   : > { %529 = vbcast.lane.b32.xlu0 %v527_v23, 256 }
  0x6d   : > { %533 = vbcast.lane.b32.xlu0 %v527_v23, 264 }
  0xdb   : > { %v530_v45 = vpop.permute.xlu0 %529 }
  0xdc   : > { %v535_v47 = vadd.f32 1.0, %v530_v45 }
  0xde   : > { %1490 = vrcp.f32 %v535_v47 }
  0xdf   : > { %v534_v46 = vpop.permute.xlu0 %533 }
  0xe0   : > { %v536_v48 = vadd.f32 1.0, %v534_v46 }
  0xe2   : > { %1492 = vrcp.f32 %v536_v48 }
  0xe8   : > { %v1491_v1 = vpop.eup %1490 }
  0xec   : > { %v1493_v2 = vpop.eup %1492 }
 0x12a   : > { %v428_v50 = vpop.f32.mrb[0].mxu0 }
 0x12b   : > { %v1344_v30 = vpop.f32.mrb[0].mxu1  ;;  %v1909_v52 = vpop.f32.mrb[1].mxu0  ;;  %v429_v11 = vadd.f32 %v428_v50, %v349_v54 }
 0x12c   : > { %v1879_v31 = vadd.f32 %v1344_v30, %v357_v29  ;;  %v481_v32 = vpop.f32.mrb[1].mxu1  ;;  %v432_v53 = vpop.f32.mrb[2].mxu0  ;;  %v1948_v30 = vld [vmem:[%s2079_s5] sm:$0xff]  }
 0x12d   : > { %v1345_v33 = vpop.f32.mrb[2].mxu1  ;;  %v1883_v36 = vadd.f32 %v481_v32, %v357_v29  ;;  %v1911_v55 = vpop.f32.mrb[3].mxu0  ;;  %v433_v12 = vadd.f32 %v432_v53, %v349_v54 }
 0x12e   : > { %v1881_v34 = vadd.f32 %v1345_v33, %v357_v29  ;;  %v484_v35 = vpop.f32.mrb[3].mxu1 }
 0x12f   : > { %v1885_v37 = vadd.f32 %v484_v35, %v357_v29  ;;  %v1943_v29 = vld [vmem:[%s2080_s6] ss:$0 sm:$0xff] }
 0x131   : > { %v541_v38 = vpack.c.bf16 %v1885_v37, %v1883_v36 }
 0x132   : > { %v438_v57 = vpop.f32.mrb[4].mxu0 }
 0x133   : > { %1347 = vmatpush3.bf16.msra.mxu1 %v541_v38  ;;  %v1915_v58 = vadd.f32 %v438_v57, %v349_v54  ;;  %v440_v59 = vpop.f32.mrb[5].mxu0 }
 0x134   : > { %1352 = vmatprep.subr.bf16.mxu1 %v1670_v3  ;;  %v1918_v60 = vadd.f32 %v440_v59, %v1913_v56  ;;  %v442_v61 = vpop.f32.mrb[6].mxu0 }
 0x135   : > { %v1920_v62 = vadd.f32 %v442_v61, %v349_v54  ;;  %v444_v63 = vpop.f32.mrb[7].mxu0  ;;  %v1301_v61 = vld [vmem:[%s1849_s29 + $0x8] sm:$0xff]  }
 0x136   : > { %1349 = vmatmul.mubr.msk.bf16.vlgmr.msra.gmra.mrb[4].mxu1 %vm387_vm0, %v515_v4  ;;  %v1923_v0 = vadd.f32 %v444_v63, %v1913_v56 }
 0x137   : > { %1353 = vmatpush3.bf16.msra.mxu1 %v1889_v39  ;;  %1360 = vmatprep.mubr.msk.bf16.mxu1 %vm1671_vm1, %v1670_v3 }
 0x138   : > { %1354 = vmatprep.subr.bf16.mxu1 %v1670_v3 }
 0x13b   : > { %1355 = vmatpush3.bf16.msra.mxu1 %v1894_v40 }
 0x13c   : > { %1356 = vmatprep.subr.bf16.mxu1 %v1670_v3 }
 0x13f   : > { %1357 = vmatpush3.bf16.msra.mxu1 %v1901_v41 }
 0x140   : > { %1358 = vmatprep.subr.bf16.mxu1 %v1670_v3 }
 0x143   : > { %1359 = vmatpush3.bf16.msra.mxu1 %v1905_v44 }
 0x144   : > { %951 = vmatprep.subr.bf16.mxu1 %v1472_v16 }
 0x209   : > { %v584_v4 = vpop.f32.mrb[4].mxu1 }
 0x20a   : > { %v591_v5 = vmul.f32 %v1491_v1, %v584_v4  ;;  %v1350_v6 = vpop.f32.mrb[5].mxu1  ;;  %v871_v4 = vunpack.c.l.bf16 %v1301_v61 }
 0x20b   : > { %v587_v7 = vpop.f32.mrb[6].mxu1 }
 0x20c   : > { %v592_v8 = vmul.f32 %v1493_v2, %v587_v7  ;;  %v1351_v9 = vpop.f32.mrb[7].mxu1  ;;  %792 = vrot.lane.b32.xlu0 %v591_v5, %s1673_s15  ;;  %v873_v7 = vsel %vm387_vm0, %v871_v4, 0.0 }
 0x20e   : > { %v593_v10 = vpack.c.bf16 %v592_v8, %v591_v5 }
 0x210   : > { %1292 = vmatmul.mubr.msk.bf16.vlgmr.msra.gmra.mrb[8].mxu0 %vm658_vm2, %v593_v10  ;;  %1361 = vmatmul.mubr.msk.bf16.vlgmr.msra.gmra.mrb[8].mxu1 %vm658_vm2, %v593_v10 }
 0x211   : > { %1366 = vmatprep.mubr.msk.bf16.mxu0 %vm1671_vm1, %v1670_v3  ;;  %952 = vmatpush1.bf16.msra.mxu1 %v1856_v15 }
 0x212   : > { %953 = vmatprep.subr.bf16.mxu1 %v1859_v19  ;;  %983 = vmatprep.mubr.bf16.mxu1 %v1672_v18 }
 0x213   : > { %1365 = vmatpush3.bf16.msra.mxu0 %v1948_v30 }
 0x214   : > { %1370 = vmatprep.subr.bf16.mxu0 %v1670_v3 }
 0x215   : > { %954 = vmatpush1.bf16.msra.mxu1 %v1863_v21 }
 0x216   : > { %955 = vmatprep.subr.bf16.mxu1 %v1867_v22 }
 0x219   : > { %956 = vmatpush1.bf16.msra.mxu1 %v1870_v24 }
 0x21a   : > { %957 = vmatprep.subr.bf16.mxu1 %v1484_v42 }
 0x21d   : > { %958 = vmatpush1.bf16.msra.mxu1 %v1482_v43 }
 0x21e   : > { %1388 = vmatprep.subr.bf16.mxu1 %v1670_v3 }
 0x27e   : > { %v793_v1 = vpop.permute.xlu0 %792 }
 0x2e3   : > { %v696_v13 = vpop.f32.mrb[8].mxu0  ;;  %v739_v14 = vpop.f32.mrb[8].mxu1 }
 0x2e4   : > { %v768_v16 = vadd.f32 %v696_v13, %v429_v11  ;;  %748 = vrot.lane.b32.xlu1 %v739_v14, %s1674_s10  ;;  %v698_v15 = vpop.f32.mrb[9].mxu0  ;;  %v1362_v17 = vpop.f32.mrb[9].mxu1 }
 0x2e5   : > { %v700_v18 = vpop.f32.mrb[10].mxu0  ;;  %v742_v19 = vpop.f32.mrb[10].mxu1  ;;  %v788_v32 = vadd.f32 %v1943_v29, %v698_v15  ;;  %v895_v15 = vpack.c.bf16 %v1881_v34, %v1879_v31 }
 0x2e6   : > { %v1296_v20 = vmul.f32 -1.442695, %v768_v16  ;;  %v769_v21 = vadd.f32 %v700_v18, %v433_v12  ;;  %v702_v22 = vpop.f32.mrb[11].mxu0  ;;  %v1363_v23 = vpop.f32.mrb[11].mxu1 }
 0x2e7   : > { %v789_v38 = vadd.f32 %v1943_v29, %v702_v22 }
 0x2e8   : > { %1494 = vpow2.f32 %v1296_v20  ;;  %v1297_v24 = vmul.f32 -1.442695, %v769_v21  ;;  %750 = vrot.lane.b32.xlu1 %v742_v19, %s1674_s10 }
 0x2ea   : > { %1496 = vpow2.f32 %v1297_v24 }
 0x2ec   : > { %794 = vrot.lane.b32.xlu1 %v592_v8, %s1673_s15 }
 0x2f2   : > { %v1495_v25 = vpop.eup %1494 }
 0x2f3   : > { %v776_v26 = vadd.f32 1.0, %v1495_v25 }
 0x2f4   : > { %v1497_v27 = vpop.eup %1496 }
 0x2f5   : > { %1498 = vrcp.f32 %v776_v26  ;;  %v777_v28 = vadd.f32 1.0, %v1497_v27 }
 0x2f7   : > { %1500 = vrcp.f32 %v777_v28 }
 0x2ff   : > { %v1953_v33 = vpop.eup %1498 }
 0x300   : > { %v1956_v35 = vmul.f32 %v1953_v33, %v788_v32 }
 0x301   : > { %v1959_v42 = vpop.eup %1500 }
 0x302   : > { %v1962_v43 = vmul.f32 %v1959_v42, %v789_v38 }
 0x356   : > { %v749_v45 = vpop.permute.xlu1 %748 }
 0x357   : > { %v754_v46 = vadd.f32 %v749_v45, %v1883_v36  ;;  %v872_v36 = vunpack.c.h.bf16 %v1301_v61 }
 0x359   : > { %v1294_v47 = vmul.f32 -1.442695, %v754_v46 }
 0x35a   : > { %v751_v48 = vpop.permute.xlu1 %750 }
 0x35b   : > { %1502 = vpow2.f32 %v1294_v47  ;;  %v755_v49 = vadd.f32 %v751_v48, %v1885_v37  ;;  %v874_v37 = vsel %vm387_vm0, %v872_v36, 0.0 }
 0x35c   : > { %v875_v9 = vadd.f32 %v874_v37, %v873_v7 }
 0x35d   : > { %v1295_v50 = vmul.f32 -1.442695, %v755_v49  ;;  %v859_v49 = vsub.f32 1.0, %v1959_v42 }
 0x35e   : > { %v795_v2 = vpop.permute.xlu1 %794  ;;  %v876_v10 = vrot.slane %v875_v9, 4 }
 0x35f   : > { %1504 = vpow2.f32 %v1295_v50 }
 0x360   : > { %v877_v11 = vadd.f32 %v876_v10, %v875_v9 }
 0x362   : > { %v878_v12 = vrot.slane %v877_v11, 2 }
 0x364   : > { %v879_v13 = vadd.f32 %v878_v12, %v877_v11 }
 0x365   : > { %v1503_v51 = vpop.eup %1502 }
 0x366   : > { %v762_v53 = vadd.f32 1.0, %v1503_v51  ;;  %v880_v14 = vrot.slane %v879_v13, 1 }
 0x368   : > { %1506 = vrcp.f32 %v762_v53  ;;  %v881_v16 = vadd.f32 %v880_v14, %v879_v13 }
 0x369   : > { %v1505_v54 = vpop.eup %1504 }
 0x36a   : > { %v763_v57 = vadd.f32 1.0, %v1505_v54  ;;  %883 = vbcast.lane.b32.xlu1 %v881_v16, 256 }
 0x36c   : > { %1508 = vrcp.f32 %v763_v57 }
 0x372   : > { %v1507_v59 = vpop.eup %1506 }
 0x373   : > { %v798_v5 = vmul.f32 %v1507_v59, %v793_v1 }
 0x376   : > { %v1509_v63 = vpop.eup %1508 }
 0x377   : > { %v799_v6 = vmul.f32 %v1509_v63, %v795_v2 }
 0x379   : > { %v800_v8 = vpack.c.bf16 %v799_v6, %v798_v5 }
 0x37b   : > { %802 = vrot.lane.b32.xlu0 %v800_v8, %s1674_s10 }
 0x37f   : > { %887 = vbcast.lane.b32.xlu0 %v881_v16, 264 }
 0x3dc   : > { %v884_v19 = vpop.permute.xlu1 %883 }
 0x3dd   : > { %v889_v21 = vadd.f32 1.0, %v884_v19 }
 0x3ed   : > { %v803_v17 = vpop.permute.xlu0 %802 }
 0x3ee   : > { %1367 = vmatmul.mubr.msk.bf16.vlgmr.msra.gmra.mrb[12].mxu0 %vm387_vm0, %v803_v17 }
 0x3ef   : > { %1371 = vmatpush3.bf16.msra.mxu0 %v895_v15  ;;  %1372 = vmatprep.mubr.msk.bf16.mxu0 %vm1671_vm1, %v1670_v3 }
 0x3f0   : > { %1376 = vmatprep.subr.bf16.mxu0 %v1670_v3 }
 0x3f1   : > { %v888_v18 = vpop.permute.xlu0 %887 }
 0x3f2   : > { %v890_v20 = vadd.f32 1.0, %v888_v18 }
 0x3f4   : > { %1510 = vrcp.f32 %v890_v20 }
 0x3f5   : > { %1512 = vrcp.f32 %v889_v21 }
 0x3f6   : > { %1373 = vmatmul.mubr.msk.bf16.vlgmr.msra.gmra.mrb[16].mxu0 %vm387_vm0, %v1301_v61 }
 0x3f7   : > { %1377 = vmatpush3.bf16.msra.mxu0 %v1889_v39  ;;  %1384 = vmatprep.mubr.msk.bf16.mxu0 %vm1671_vm1, %v1670_v3  ;;  %v431_v39 = vadd.f32 %v1909_v52, %v1913_v56 }
 0x3f8   : > { %1378 = vmatprep.subr.bf16.mxu0 %v1670_v3 }
 0x3fb   : > { %1379 = vmatpush3.bf16.msra.mxu0 %v1894_v40  ;;  %v435_v40 = vadd.f32 %v1911_v55, %v1913_v56  ;;  %v858_v55 = vsub.f32 1.0, %v1953_v33 }
 0x3fc   : > { %1380 = vmatprep.subr.bf16.mxu0 %v1670_v3 }
 0x3fe   : > { %v1511_v26 = vpop.eup %1510 }
 0x3ff   : > { %1381 = vmatpush3.bf16.msra.mxu0 %v1901_v41  ;;  %v1513_v27 = vpop.eup %1512 }
 0x400   : > { %1382 = vmatprep.subr.bf16.mxu0 %v1670_v3 }
 0x403   : > { %1383 = vmatpush3.bf16.msra.mxu0 %v1905_v44 }
 0x4c1   : > { %v847_v22 = vpop.f32.mrb[12].mxu0 }
 0x4c2   : > { %v854_v23 = vadd.f32 %v847_v22, %v431_v39  ;;  %v1368_v41 = vpop.f32.mrb[13].mxu0 }
 0x4c3   : > { %v850_v24 = vpop.f32.mrb[14].mxu0 }
 0x4c4   : > { %1514 = vtanh.f32 %v854_v23  ;;  %v855_v44 = vadd.f32 %v850_v24, %v435_v40  ;;  %v1369_v25 = vpop.f32.mrb[15].mxu0 }
 0x4c6   : > { %1516 = vtanh.f32 %v855_v44 }
 0x4c9   : > { %v938_v28 = vpop.f32.mrb[16].mxu0 }
 0x4ca   : > { %v1374_v32 = vpop.f32.mrb[17].mxu0  ;;  %v945_v45 = vmul.f32 %v1513_v27, %v938_v28 }
 0x4cb   : > { %v941_v38 = vpop.f32.mrb[18].mxu0 }
 0x4cc   : > { %v946_v52 = vmul.f32 %v1511_v26, %v941_v38  ;;  %v1375_v46 = vpop.f32.mrb[19].mxu0 }
 0x4ce   : > { %v1515_v56 = vpop.eup %1514  ;;  %v947_v47 = vpack.c.bf16 %v946_v52, %v945_v45 }
 0x4cf   : > { %v860_v48 = vmul.f32 %v1515_v56, %v858_v55 }
 0x4d0   : > { %v1517_v50 = vpop.eup %1516  ;;  %1305 = vmatmul.mubr.msk.bf16.vlgmr.msra.gmra.mrb[12].mxu1 %vm658_vm2, %v947_v47  ;;  %1385 = vmatmul.mubr.msk.bf16.vlgmr.msra.gmra.mrb[20].mxu0 %vm658_vm2, %v947_v47 }
 0x4d1   : > { %v864_v51 = vadd.f32 %v1956_v35, %v860_v48  ;;  %v861_v53 = vmul.f32 %v1517_v50, %v859_v49  ;;  %1389 = vmatpush3.bf16.msra.mxu1 %v1948_v30  ;;  %1390 = vmatprep.mubr.msk.bf16.mxu1 %vm1671_vm1, %v1670_v3 }
 0x4d3   : > { %866 = vst [vmem:[%s2001_s20] sm:$0xff] %v864_v51  ;;  %v865_v33 = vadd.f32 %v1962_v43, %v861_v53 }
 0x4d5   : > { %867 = vst [vmem:[%s2001_s20 + $0x8] sm:$0xff] %v865_v33 }
 0x5a3   : > { %v985_v42 = vpop.f32.mrb[12].mxu1  ;;  %v1028_v54 = vpop.f32.mrb[20].mxu0 }
 0x5a4   : > { %v1057_v57 = vadd.f32 %v985_v42, %v1915_v58  ;;  %v987_v59 = vpop.f32.mrb[13].mxu1  ;;  %1037 = vrot.lane.b32.xlu1 %v1028_v54, %s1674_s10  ;;  %v1386_v35 = vpop.f32.mrb[21].mxu0 }
 0x5a5   : > { %v989_v30 = vpop.f32.mrb[14].mxu1  ;;  %v1031_v61 = vpop.f32.mrb[22].mxu0  ;;  %v1071_v6 = vadd.f32 %v1943_v29, %v987_v59 }
 0x5a6   : > { %v1309_v63 = vmul.f32 -1.442695, %v1057_v57  ;;  %v1058_v3 = vadd.f32 %v989_v30, %v1920_v62  ;;  %v991_v1 = vpop.f32.mrb[15].mxu1  ;;  %1039 = vrot.lane.b32.xlu0 %v1031_v61, %s1674_s10  ;;  %v1387_v2 = vpop.f32.mrb[23].mxu0 }
 0x5a7   : > { %v1072_v37 = vadd.f32 %v1943_v29, %v991_v1 }
 0x5a8   : > { %1518 = vpow2.f32 %v1309_v63  ;;  %v1310_v43 = vmul.f32 -1.442695, %v1058_v3  ;;  %1075 = vrot.lane.b32.xlu1 %v945_v45, %s1673_s15 }
 0x5aa   : > { %1520 = vpow2.f32 %v1310_v43  ;;  %1077 = vrot.lane.b32.xlu0 %v946_v52, %s1673_s15  ;;  %s1675_s15 = smov [#allocation7]  }
 0x5b2   : > { %v1519_v58 = vpop.eup %1518 }
 0x5b3   : > { %v1065_v4 = vadd.f32 1.0, %v1519_v58 }
 0x5b4   : > { %v1521_v36 = vpop.eup %1520 }
 0x5b5   : > { %1522 = vrcp.f32 %v1065_v4  ;;  %v1066_v5 = vadd.f32 1.0, %v1521_v36 }
 0x5b7   : > { %1524 = vrcp.f32 %v1066_v5 }
 0x5bf   : > { %v1523_v62 = vpop.eup %1522 }
 0x5c0   : > { %v1139_v7 = vmul.f32 %v1523_v62, %v1071_v6  ;;  %v1135_v27 = vsub.f32 1.0, %v1523_v62 }
 0x5c1   : > { %v1525_v8 = vpop.eup %1524 }
 0x5c2   : > { %v1140_v9 = vmul.f32 %v1525_v8, %v1072_v37  ;;  %v1136_v38 = vsub.f32 1.0, %v1525_v8 }
 0x616   : > { %v1038_v10 = vpop.permute.xlu1 %1037 }
 0x617   : > { %v1043_v11 = vadd.f32 %v1038_v10, %v1879_v31 }
 0x618   : > { %v1040_v12 = vpop.permute.xlu0 %1039 }
 0x619   : > { %v1307_v13 = vmul.f32 -1.442695, %v1043_v11  ;;  %v1044_v14 = vadd.f32 %v1040_v12, %v1881_v34 }
 0x61a   : > { %v1076_v21 = vpop.permute.xlu1 %1075 }
 0x61b   : > { %1526 = vpow2.f32 %v1307_v13  ;;  %v1308_v16 = vmul.f32 -1.442695, %v1044_v14 }
 0x61c   : > { %v1078_v39 = vpop.permute.xlu0 %1077 }
 0x61d   : > { %1528 = vpow2.f32 %v1308_v16 }
 0x625   : > { %v1527_v15 = vpop.eup %1526 }
 0x626   : > { %v1051_v17 = vadd.f32 1.0, %v1527_v15 }
 0x627   : > { %v1529_v18 = vpop.eup %1528 }
 0x628   : > { %1530 = vrcp.f32 %v1051_v17  ;;  %v1052_v19 = vadd.f32 1.0, %v1529_v18 }
 0x62a   : > { %1532 = vrcp.f32 %v1052_v19 }
 0x632   : > { %v1531_v20 = vpop.eup %1530 }
 0x633   : > { %v1081_v22 = vmul.f32 %v1531_v20, %v1076_v21 }
 0x634   : > { %v1533_v29 = vpop.eup %1532 }
 0x635   : > { %v1082_v40 = vmul.f32 %v1533_v29, %v1078_v39 }
 0x637   : > { %v1083_v31 = vpack.c.bf16 %v1082_v40, %v1081_v22 }
 0x639   : > { %1085 = vrot.lane.b32.xlu1 %v1083_v31, %s1674_s10  ;;  %s1598_s10 = sshll.u32 %s1675_s15, 4  ;;  %s1599_s10 = int_to_ptr.vmem [resolvable:$false] %s1598_s10 }
 0x63a   : > { %s1600_s19 = scalar_lea.vmem %s1599_s10, 1024  ;;  %p1601_p7 = scmp.lt.s32.totalorder %s2027_s22, %s1599_s10 }
 0x63b   : > { %p1602_p8 = scmp.lt.s32.totalorder %s1600_s19, %s1594_s28 }
 0x63d   : > { %p1603_p11 = por %p1602_p8, %p1601_p7 }
 0x63f   : > { %p1604_p13 = pnand %p1603_p11, %p1597_p4 }
 0x6ab   : > { %v1086_v34 = vpop.permute.xlu1 %1085 }
 0x6ac   : > { %1391 = vmatmul.mubr.msk.bf16.vlgmr.msra.gmra.mrb[16].mxu1 %vm387_vm0, %v1086_v34 }
 0x77f   : > { %v1124_v23 = vpop.f32.mrb[16].mxu1 }
 0x780   : > { %v1131_v41 = vadd.f32 %v1124_v23, %v1918_v60  ;;  %v1392_v24 = vpop.f32.mrb[17].mxu1 }
 0x781   : > { %v1127_v44 = vpop.f32.mrb[18].mxu1 }
 0x782   : > { %1534 = vtanh.f32 %v1131_v41  ;;  %v1132_v25 = vadd.f32 %v1127_v44, %v1923_v0  ;;  %v1393_v26 = vpop.f32.mrb[19].mxu1 }
 0x784   : > { %1536 = vtanh.f32 %v1132_v25 }
 0x78c   : > { %v1535_v28 = vpop.eup %1534 }
 0x78d   : > { %v1137_v32 = vmul.f32 %v1535_v28, %v1135_v27 }
 0x78e   : > { %v1537_v45 = vpop.eup %1536 }
 0x78f   : > { %v1141_v52 = vadd.f32 %v1139_v7, %v1137_v32  ;;  %v1138_v60 = vmul.f32 %v1537_v45, %v1136_v38 }
 0x791   : > { %1143 = vst [vmem:[%s2001_s20 + $0x10] sm:$0xff] %v1141_v52  ;;  %v1142_v0 = vadd.f32 %v1140_v9, %v1138_v60 }
 0x793   : > { %1144 = vst [vmem:[%s2001_s20 + $0x18] sm:$0xff] %v1142_v0 }
 0x794   : > { %1607 = shalt.err (!%p1604_p13)
}
 0x795   : > { %s1608_s16 = scalar_lea.hbm %s2025_s8, 512  ;;  %s1612_s14 = scalar_lea.hbm %s2081_s7, 1024 }
 0x796   : > { %p1609_p5 = scmp.ne.s32.totalorder %s2025_s8, %s1608_s16  ;;  %p1613_p9 = scmp.lt.u32.totalorder %s2025_s8, %s2081_s7 }
 0x797   : > { %p1614_p10 = scmp.lt.u32.totalorder %s1612_s14, %s1608_s16  ;;  %p1616_p1 = scmp.lt.u32.totalorder %s1608_s16, %s2025_s8 }
 0x798   : > { %p1610_p0 = pnand %p1609_p5, %p2095_p2 }
 0x799   : > { %p1615_p12 = por %p1614_p10, %p1613_p9 }
 0x79a   : > { %p1611_p6 = pneg %p1610_p0 }
 0x79b   : > { %p1617_p3 = por %p1616_p1, %p1615_p12 }
 0x79d   : > { %p1618_p4 = pnand %p1617_p3, %p1611_p6 }
 0x79f   : > { %1621 = shalt.err (!%p1618_p4)
}
 0x7a0   : > { %s1676_s21 = smov 128   ;;  %s1677_s23 = smov 8  }
 0x7a1   : > { %1402 = dma.vmem_to_hbm [thread:$0]  (%p2095_p2), %s2027_s22, 512, %s2025_s8, %s2033_s9, %s1676_s21, %s1676_s21, %s1677_s23  }
 0x7a2 PF: > { %p1419_p7 = scmp.ge.s32.totalorder %s1664_s27, 2  ;;  %s1174_s29 = sand.u32 1, %s1652_s24  }
 0x7a3   : > { %p2096_p8 = scmp.ne.s32.totalorder %s2087_s12, 0  ;;  %s1175_s28 = scalar_lea.sflag [#allocation4], %s1174_s29 }
 0x7a5   : > { %p1412_p11 = pnand %p1419_p7, %p2096_p8 }
 0x7a7   : > { %1647 = dma.done.wait (!%p1412_p11), %s1175_s28, 512  }
 0x7a8   : > { %1649 = vsyncadd (!%p1412_p11), %s1175_s28, 4294966784  ;;  %s2097_s15 = sld [smem:[#allocation11_spill]]  ;;  %p19_p13 = scmp.ge.s32.totalorder %s1743_s30, 4  }
 0x7a9   : > { %s2098_s24 = smov %s1656_s25  ;;  %s2099_s25 = smov %s1660_s26 }
 0x7aa   : > { %s2101_s27 = smov %s1743_s30  ;;  %21 = sbr.rel (!%p19_p13) target bundleno = 5 (0x5), region = 96 }
 0x7ae   : > { %s2100_s26 = smov %s2097_s15 }
 0x7b1   :  { %1180 = vsyncpa [#allocation3], 1 }
 0x7b2   :  { %1182 = vsyncpa [#allocation3 + $0x1], 1 }
 0x7b3   :  { %1183 = vsyncpa [#allocation6], 1 }
 0x7b4   :  { %1184 = vsyncpa [#allocation4], 1 }
 0x7b5   :  { %1186 = vsyncpa [#allocation4 + $0x1], 1 }

</bundles_post_ra>
